<compile_context>
chip_gen: v7x
topology: tpu7x:2x2x1
jax: 0.10.0
libtpu: 0.0.40
codegen_flags: <defaults>
</compile_context>

<pallas_src>
import functools

import jax
import jax.numpy as jnp
from jax.experimental import pallas as pl
from jax.experimental.pallas import tpu as pltpu


_LANE = 512          # tile granularity when the batch is split across grid steps
_SINGLE_TILE_MAX = 2 * _LANE  # below this, one tile covers the whole batch


def _round_up(n, m):
    return (n + m - 1) // m * m


def _choose_batch_tile(B, block_b):
    """Pick (tile_rows, n_tiles).

    Big tiles amortize the per-grid-step pipeline overhead; once B is large we
    also cap the tile at ceil(B/2) (rounded to _LANE) so there are >= 2 grid
    steps and the "parallel" axis can feed both of v7x's TensorCores.
    """
    if B <= _SINGLE_TILE_MAX:
        return _round_up(max(B, 1), 8), 1           # sublane-aligned single tile
    half = _round_up(pl.cdiv(B, 2), _LANE)
    tb = max(_LANE, min(_round_up(block_b, _LANE), half))
    return tb, pl.cdiv(B, tb)


def _mlp_kernel(x_ref, w1_ref, b1_ref, w2_ref, b2_ref, w3_ref, b3_ref, o_ref):
    """x_ref: [TB, S] f32 straight from HBM. Weights [out, in] bf16, biases [out, 1] f32."""
    cd = w1_ref.dtype                                   # streaming dtype (bf16); MXU acc is f32
    xt = x_ref[...].astype(cd)                          # [TB, S] cast on the (idle) VPU
    # Contract the S axis of both operands -> result [32, TB]: batch on lanes,
    # no wrapper transpose and no extra HBM pass.
    h1 = jax.lax.dot_general(w1_ref[...], xt, (((1,), (1,)), ((), ())),
                             preferred_element_type=jnp.float32)
    h1 = jnp.maximum(h1 + b1_ref[...], 0.0).astype(cd)                     # [32, TB]
    h2 = jnp.dot(w2_ref[...], h1, preferred_element_type=jnp.float32)
    h2 = jnp.maximum(h2 + b2_ref[...], 0.0).astype(cd)                     # [16, TB]
    out = jnp.dot(w3_ref[...], h2, preferred_element_type=jnp.float32)
    o_ref[...] = (out + b3_ref[...]).astype(o_ref.dtype)                   # [1, TB] lane-dense


@functools.partial(jax.jit, static_argnames=("block_b", "compute_dtype"))
def value_network_forward(x, params, *, block_b=32768, compute_dtype=jnp.bfloat16):
    """x: [B, state_size] float32 -> [B, 1] float32."""
    w1, b1, w2, b2, w3, b3 = params
    B, S = x.shape

    tb, n_tiles = _choose_batch_tile(B, block_b)
    b_pad = n_tiles * tb

    # Only the (tiny) weights are pre-cast; x streams from HBM untouched (f32).
    w1c, w2c, w3c = (w.astype(compute_dtype) for w in (w1, w2, w3))
    b1c, b2c, b3c = (b.astype(jnp.float32) for b in (b1, b2, b3))

    wspec = lambda a: pl.BlockSpec(a.shape, lambda i: (0, 0))  # VMEM-resident weight/bias

    out_t = pl.pallas_call(
        _mlp_kernel,
        out_shape=jax.ShapeDtypeStruct((1, b_pad), jnp.float32),
        grid=(n_tiles,),
        in_specs=[
            pl.BlockSpec((tb, S), lambda i: (i, 0)),    # x tile (ragged tail reads OOB rows:
            wspec(w1c), wspec(b1c),                     #  rows are independent, tail sliced off)
            wspec(w2c), wspec(b2c),
            wspec(w3c), wspec(b3c),
        ],
        out_specs=pl.BlockSpec((1, tb), lambda i: (0, i)),  # lane-dense output store
        compiler_params=pltpu.CompilerParams(
            dimension_semantics=("parallel",),          # shard batch tiles over v7x's 2 TCs
            vmem_limit_bytes=40 * 1024 * 1024,          # v7x-safe; raise on v5e/v6e (128 MiB VMEM)
        ),
    )(x, w1c, b1c, w2c, b2c, w3c, b3c)

    return out_t[:, :B].T  # [B, 1]


def init_params(key, state_size):
    """nn.Linear-style U(-1/sqrt(fan_in), 1/sqrt(fan_in)); W stored PyTorch-style [out, in]."""
    def linear(k, fan_in, fan_out):
        kw, kb = jax.random.split(k)
        bound = 1.0 / jnp.sqrt(float(fan_in))
        w = jax.random.uniform(kw, (fan_out, fan_in), jnp.float32, -bound, bound)
        b = jax.random.uniform(kb, (fan_out, 1), jnp.float32, -bound, bound)
        return w, b

    k1, k2, k3 = jax.random.split(key, 3)
    w1, b1 = linear(k1, state_size, 32)
    w2, b2 = linear(k2, 32, 16)
    w3, b3 = linear(k3, 16, 1)
    return (w1, b1, w2, b2, w3, b3)


def _reference_matched(x, params, compute_dtype=jnp.bfloat16):
    """Same math / same precision recipe as the kernel (bf16 stream, f32 accumulate)."""
    w1, b1, w2, b2, w3, b3 = params
    cd = compute_dtype
    xt = x.astype(cd)
    h1 = jax.lax.dot_general(w1.astype(cd), xt, (((1,), (1,)), ((), ())),
                             preferred_element_type=jnp.float32)
    h1 = jnp.maximum(h1 + b1, 0.0).astype(cd)
    h2 = jnp.dot(w2.astype(cd), h1, preferred_element_type=jnp.float32)
    h2 = jnp.maximum(h2 + b2, 0.0).astype(cd)
    out = jnp.dot(w3.astype(cd), h2, preferred_element_type=jnp.float32) + b3
    return out.T


def _reference_f32(x, params):
    """Straight f32 semantics of the PyTorch module."""
    w1, b1, w2, b2, w3, b3 = params
    h = jnp.maximum(x @ w1.T + b1.T, 0.0)
    h = jnp.maximum(h @ w2.T + b2.T, 0.0)
    return h @ w3.T + b3.T


if __name__ == "__main__":
    key = jax.random.PRNGKey(0)
    k_x, k_p, k_x2 = jax.random.split(key, 3)

    batch = 2
    state_size = 8
    x = jax.random.normal(k_x, (batch, state_size), jnp.float32)
    params = init_params(k_p, state_size)

    # Small-shape run (single-tile path).
    y = value_network_forward(x, params)
    y = jax.block_until_ready(y)
    assert y.shape == (batch, 1)

    # Tight check against a precision-matched reference (bf16 stream, f32 acc).
    y_ref = _reference_matched(x, params)
    assert jnp.allclose(y, y_ref, atol=1e-4, rtol=1e-4), (y, y_ref)

    # Loose check against the pure-f32 PyTorch semantics (bf16 rounding slack).
    y_f32 = _reference_f32(x, params)
    assert jnp.allclose(y, y_f32, atol=5e-2, rtol=5e-2), (y, y_f32)

    # Exercise the multi-tile path with a ragged last tile (OOB tail rows).
    b2_ = 2560
    x2 = jax.random.normal(k_x2, (b2_, state_size), jnp.float32)
    y2 = jax.block_until_ready(value_network_forward(x2, params))
    assert y2.shape == (b2_, 1)
    y2_ref = _reference_matched(x2, params)
    assert jnp.allclose(y2, y2_ref, atol=1e-4, rtol=1e-4)

    print("KERNEL_OK")
</pallas_src>

<mosaic_0001>
module attributes {stable_mosaic.version = 11 : i64} {
  func.func @_mlp_kernel(%arg0: i32, %arg1: memref<8x8xf32, #tpu.memory_space<vmem>>, %arg2: memref<32x8xbf16, #tpu.memory_space<vmem>>, %arg3: memref<32x1xf32, #tpu.memory_space<vmem>>, %arg4: memref<16x32xbf16, #tpu.memory_space<vmem>>, %arg5: memref<16x1xf32, #tpu.memory_space<vmem>>, %arg6: memref<1x16xbf16, #tpu.memory_space<vmem>>, %arg7: memref<1x1xf32, #tpu.memory_space<vmem>>, %arg8: memref<1x8xf32, #tpu.memory_space<vmem>>) attributes {dimension_semantics = [#tpu.dimension_semantics<parallel>], iteration_bounds = array<i64: 1>, scalar_prefetch = 0 : i64, scratch_operands = 0 : i64, tpu.core_type = #tpu.core_type<tc>, window_params = [{transform_indices = @transform_0, window_bounds = array<i64: 8, 8>}, {pipeline_mode = #tpu.pipeline_mode<synchronous>, transform_indices = @transform_1, window_bounds = array<i64: 32, 8>}, {pipeline_mode = #tpu.pipeline_mode<synchronous>, transform_indices = @transform_2, window_bounds = array<i64: 32, 1>}, {pipeline_mode = #tpu.pipeline_mode<synchronous>, transform_indices = @transform_3, window_bounds = array<i64: 16, 32>}, {pipeline_mode = #tpu.pipeline_mode<synchronous>, transform_indices = @transform_4, window_bounds = array<i64: 16, 1>}, {pipeline_mode = #tpu.pipeline_mode<synchronous>, transform_indices = @transform_5, window_bounds = array<i64: 1, 16>}, {pipeline_mode = #tpu.pipeline_mode<synchronous>, transform_indices = @transform_6, window_bounds = array<i64: 1, 1>}, {transform_indices = @transform_7, window_bounds = array<i64: 1, 8>}]} {
    %c0 = arith.constant 0 : index
    %c0_0 = arith.constant 0 : index
    %0 = vector.load %arg1[%c0, %c0_0] : memref<8x8xf32, #tpu.memory_space<vmem>>, vector<8x8xf32>
    %1 = arith.truncf %0 : vector<8x8xf32> to vector<8x8xbf16>
    %c0_1 = arith.constant 0 : index
    %c0_2 = arith.constant 0 : index
    %2 = vector.load %arg2[%c0_1, %c0_2] : memref<32x8xbf16, #tpu.memory_space<vmem>>, vector<32x8xbf16>
    %cst = arith.constant dense<0.000000e+00> : vector<32x8xf32>
    %3 = tpu.matmul %2, %1, %cst {dimension_numbers = #tpu.dot_dimension_numbers<[1], [1], [0], [0], [0, 0, 1, 0], [], []>} : vector<32x8xbf16>, vector<8x8xbf16>, vector<32x8xf32> -> vector<32x8xf32>
    %c0_3 = arith.constant 0 : index
    %c0_4 = arith.constant 0 : index
    %4 = vector.load %arg3[%c0_3, %c0_4] : memref<32x1xf32, #tpu.memory_space<vmem>>, vector<32x1xf32>
    %5 = vector.broadcast %4 : vector<32x1xf32> to vector<32x8xf32>
    %6 = arith.addf %3, %5 : vector<32x8xf32>
    %cst_5 = arith.constant 0.000000e+00 : f32
    %7 = vector.broadcast %cst_5 : f32 to vector<32x8xf32>
    %8 = arith.maximumf %6, %7 : vector<32x8xf32>
    %9 = arith.truncf %8 : vector<32x8xf32> to vector<32x8xbf16>
    %c0_6 = arith.constant 0 : index
    %c0_7 = arith.constant 0 : index
    %10 = vector.load %arg4[%c0_6, %c0_7] : memref<16x32xbf16, #tpu.memory_space<vmem>>, vector<16x32xbf16>
    %cst_8 = arith.constant dense<0.000000e+00> : vector<16x8xf32>
    %11 = tpu.matmul %10, %9, %cst_8 {dimension_numbers = #tpu.dot_dimension_numbers<[1], [0], [0], [1], [0, 0, 1, 1], [], []>} : vector<16x32xbf16>, vector<32x8xbf16>, vector<16x8xf32> -> vector<16x8xf32>
    %c0_9 = arith.constant 0 : index
    %c0_10 = arith.constant 0 : index
    %12 = vector.load %arg5[%c0_9, %c0_10] : memref<16x1xf32, #tpu.memory_space<vmem>>, vector<16x1xf32>
    %13 = vector.broadcast %12 : vector<16x1xf32> to vector<16x8xf32>
    %14 = arith.addf %11, %13 : vector<16x8xf32>
    %cst_11 = arith.constant 0.000000e+00 : f32
    %15 = vector.broadcast %cst_11 : f32 to vector<16x8xf32>
    %16 = arith.maximumf %14, %15 : vector<16x8xf32>
    %17 = arith.truncf %16 : vector<16x8xf32> to vector<16x8xbf16>
    %c0_12 = arith.constant 0 : index
    %c0_13 = arith.constant 0 : index
    %18 = vector.load %arg6[%c0_12, %c0_13] : memref<1x16xbf16, #tpu.memory_space<vmem>>, vector<1x16xbf16>
    %cst_14 = arith.constant dense<0.000000e+00> : vector<1x8xf32>
    %19 = tpu.matmul %18, %17, %cst_14 {dimension_numbers = #tpu.dot_dimension_numbers<[1], [0], [0], [1], [0, 0, 1, 1], [], []>} : vector<1x16xbf16>, vector<16x8xbf16>, vector<1x8xf32> -> vector<1x8xf32>
    %c0_15 = arith.constant 0 : index
    %c0_16 = arith.constant 0 : index
    %20 = vector.load %arg7[%c0_15, %c0_16] : memref<1x1xf32, #tpu.memory_space<vmem>>, vector<1x1xf32>
    %21 = vector.broadcast %20 : vector<1x1xf32> to vector<1x8xf32>
    %22 = arith.addf %19, %21 : vector<1x8xf32>
    %c0_17 = arith.constant 0 : index
    %c0_18 = arith.constant 0 : index
    %23 = vector.load %arg8[%c0_17, %c0_18] : memref<1x8xf32, #tpu.memory_space<vmem>>, vector<1x8xf32>
    tpu.vector_store %arg8[%c0_17, %c0_18], %22 {strides = array<i32>} : memref<1x8xf32, #tpu.memory_space<vmem>>, vector<1x8xf32>,
    return
  }
  func.func @transform_0(%arg0: i32) -> (i32, i32) {
    %c0_i32 = arith.constant 0 : i32
    %c0_i32_0 = arith.constant 0 : i32
    return %arg0, %c0_i32 : i32, i32
  }
  func.func @transform_1(%arg0: i32) -> (i32, i32) {
    %c0_i32 = arith.constant 0 : i32
    %c0_i32_0 = arith.constant 0 : i32
    %c0_i32_1 = arith.constant 0 : i32
    return %c0_i32, %c0_i32_0 : i32, i32
  }
  func.func @transform_2(%arg0: i32) -> (i32, i32) {
    %c0_i32 = arith.constant 0 : i32
    %c0_i32_0 = arith.constant 0 : i32
    %c0_i32_1 = arith.constant 0 : i32
    return %c0_i32, %c0_i32_0 : i32, i32
  }
  func.func @transform_3(%arg0: i32) -> (i32, i32) {
    %c0_i32 = arith.constant 0 : i32
    %c0_i32_0 = arith.constant 0 : i32
    %c0_i32_1 = arith.constant 0 : i32
    return %c0_i32, %c0_i32_0 : i32, i32
  }
  func.func @transform_4(%arg0: i32) -> (i32, i32) {
    %c0_i32 = arith.constant 0 : i32
    %c0_i32_0 = arith.constant 0 : i32
    %c0_i32_1 = arith.constant 0 : i32
    return %c0_i32, %c0_i32_0 : i32, i32
  }
  func.func @transform_5(%arg0: i32) -> (i32, i32) {
    %c0_i32 = arith.constant 0 : i32
    %c0_i32_0 = arith.constant 0 : i32
    %c0_i32_1 = arith.constant 0 : i32
    return %c0_i32, %c0_i32_0 : i32, i32
  }
  func.func @transform_6(%arg0: i32) -> (i32, i32) {
    %c0_i32 = arith.constant 0 : i32
    %c0_i32_0 = arith.constant 0 : i32
    %c0_i32_1 = arith.constant 0 : i32
    return %c0_i32, %c0_i32_0 : i32, i32
  }
  func.func @transform_7(%arg0: i32) -> (i32, i32) {
    %c0_i32 = arith.constant 0 : i32
    %c0_i32_0 = arith.constant 0 : i32
    return %c0_i32, %arg0 : i32, i32
  }
}

</mosaic_0001>

<bundles_post_ra>
// kernel: value_network_forward.1
= control target key start
LH: loop header
LB: loop body
LE: loop exit
PB: predicated region body
PF: predicated region fallthrough
CT: control target
= control target key end

     0   :  { %vm69_vm0 = vcmask 64512   ;;  %v306_v1 = vmov 0   ;;  %v307_v14 = vmov 0.0   ;;  %vm308_vm1 = vmmov 0   ;;  %s392_s0 = inlined_call_operand.vmem [shape: f32[2,8], index: 0, kind: input, shape index: {}]   ;;  %s393_s1 = inlined_call_operand.vmem [shape: bf16[32,8], index: 1, kind: input, shape index: {}]   ;;  %s394_s2 = inlined_call_operand.vmem [shape: f32[32,1], index: 2, kind: input, shape index: {}]   ;;  %s395_s6 = inlined_call_operand.<no memory space> [shape: f32[1,1], index: 6, kind: input, shape index: {}]   ;;  %s396_s4 = inlined_call_operand.vmem [shape: f32[16,1], index: 4, kind: input, shape index: {}]   ;;  %s397_s3 = inlined_call_operand.vmem [shape: bf16[16,32], index: 3, kind: input, shape index: {}]   ;;  %s398_s5 = inlined_call_operand.vmem [shape: bf16[1,16], index: 5, kind: input, shape index: {}]   ;;  %s399_s7 = inlined_call_operand.vmem [shape: f32[1,8], index: 7, kind: output, shape index: {}]  }
   0x1   :  { %v29_v0 = vld [vmem:[%s392_s0] sm:$0xff]  ;;  %301 = vset.pattern.permute.xlu0 %v306_v1  ;;  %302 = vset.pattern.permute.xlu1 %v306_v1  ;;  %v12_v2 = vstv %s395_s6  ;;  %v37_v7 = vld [vmem:[%s394_s2 + $0x10] sm:$0xff]  ;;  %v36_v8 = vld [vmem:[%s394_s2 + $0x8] sm:$0xff]  ;;  %vm153_vm2 = vcmask 261120   ;;  %vm212_vm3 = vcmask 130048   ;;  %v208_v46 = vlaneseq }
   0x2   :  { %v30_v3 = vpack.c.bf16 %v29_v0, %v29_v0  ;;  %v303_v4 = vld [vmem:[%s393_s1] sm:$0xff]   ;;  %13 = vst [vmem:[#allocation2] sm:$0x1] %v12_v2  ;;  %51 = vperm.xlu1 %302, %v37_v7   ;;  %v38_v9 = vld [vmem:[%s394_s2 + $0x18] sm:$0xff]  ;;  %v304_v10 = vld [vmem:[%s393_s1 + $0x8] sm:$0xff]   ;;  %283 = vmatprep.subr.bf16.mxu1 %v307_v14  ;;  %vm256_vm4 = vcmask 57344  }
   0x3   :  { %v35_v5 = vld [vmem:[%s394_s2] sm:$0xff]  ;;  %279 = vmatprep.mubr.msk.bf16.mxu0 %vm69_vm0, %v303_v4  ;;  %v137_v12 = vld [vmem:[%s396_s4 + $0x8] sm:$0xff]  ;;  %287 = vmatprep.mubr.msk.bf16.mxu1 %vm308_vm1, %v307_v14  ;;  %v209_v47 = vshrl.u32 %v208_v46, 7 }
   0x4   :  { %297 = vmatprep.subr.msk.bf16.mxu0 %vm69_vm0, %v30_v3  ;;  %v77_v6 = vsel %vm69_vm0, %v30_v3, 0  ;;  %41 = vperm.xlu0 %301, %v35_v5   ;;  %v136_v11 = vld [vmem:[%s396_s4] sm:$0xff] }
   0x5   :  { %278 = vmatpush3.bf16.xpose.msra.mxu0 %v77_v6  ;;  %v305_v33 = vld [vmem:[%s397_s3] sm:$0xff]   ;;  %v210_v48 = vsub.s32 0, %v209_v47 }
   0x6   :  { %56 = vperm.xlu1 %302, %v38_v9   ;;  %291 = vmatprep.subr.bf16.mxu0 %v307_v14  ;;  %v201_v45 = vld [vmem:[%s398_s5] sm:$0x1] }
   0x8   :  { %46 = vperm.xlu0 %301, %v36_v8  }
   0x9   :  { %v202_v13 = vld [vmem:[#allocation2] sm:$0x1] }
   0xa   :  { %145 = vperm.xlu1 %302, %v137_v12  }
   0xc   :  { %280 = vmatmul.mubr.msk.bf16.vlgmr.msra.gmra.mrb[0].mxu0 %vm69_vm0, %v304_v10  ;;  %140 = vperm.xlu0 %301, %v136_v11  }
   0xd   :  { %293 = vmatprep.mubr.msk.bf16.mxu0 %vm308_vm1, %v307_v14 }
  0x10   :  { %205 = vperm.xlu0 %301, %v202_v13  }
  0x81   :  { %v52_v15 = vpop.permute.xlu1 %51 }
  0x83   :  { %v42_v16 = vpop.permute.xlu0 %41 }
  0x85   :  { %v57_v20 = vpop.permute.xlu1 %56 }
  0x87   :  { %v47_v23 = vpop.permute.xlu0 %46 }
  0x89   :  { %v146_v38 = vpop.permute.xlu1 %145 }
  0x8b   :  { %v141_v34 = vpop.permute.xlu0 %140 }
  0x8f   :  { %v206_v49 = vpop.permute.xlu0 %205 }
  0x90   :  { %v211_v50 = vrot.slane %v206_v49, %v210_v48 }
  0xdf   :  { %v281_v17 = vpop.f32.mrb[0].mxu0 }
  0xe0   :  { %v122_v18 = vadd.f32 %v281_v17, %v52_v15  ;;  %v113_v19 = vpop.f32.mrb[1].mxu0 }
  0xe1   :  { %v114_v21 = vadd.f32 %v113_v19, %v42_v16  ;;  %v282_v22 = vpop.f32.mrb[2].mxu0 }
  0xe2   :  { %v125_v24 = vadd.f32 %v282_v22, %v57_v20  ;;  %v116_v25 = vpop.f32.mrb[3].mxu0  ;;  %v130_v27 = vmax.f32 %v122_v18, 0.0 }
  0xe3   :  { %v117_v26 = vadd.f32 %v116_v25, %v47_v23  ;;  %v128_v29 = vmax.f32 %v114_v21, 0.0 }
  0xe4   :  { %v131_v28 = vmax.f32 %v125_v24, 0.0 }
  0xe5   :  { %v129_v30 = vmax.f32 %v117_v26, 0.0 }
  0xe6   :  { %v133_v31 = vpack.c.bf16 %v131_v28, %v130_v27 }
  0xe7   :  { %v132_v32 = vpack.c.bf16 %v129_v30, %v128_v29 }
  0xe9   :  { %284 = vmatpush3.bf16.msra.mxu1 %v132_v32 }
  0xea   :  { %285 = vmatprep.subr.bf16.mxu1 %v307_v14 }
  0xed   :  { %286 = vmatpush3.bf16.msra.mxu1 %v133_v31 }
  0xf0   :  { %288 = vmatmul.mubr.msk.bf16.vlgmr.msra.gmra.mrb[0].mxu1 %vm153_vm2, %v305_v33 }
 0x1c3   :  { %v191_v35 = vpop.f32.mrb[0].mxu1 }
 0x1c4   :  { %v192_v36 = vadd.f32 %v191_v35, %v141_v34  ;;  %v289_v37 = vpop.f32.mrb[1].mxu1 }
 0x1c5   :  { %v194_v39 = vpop.f32.mrb[2].mxu1 }
 0x1c6   :  { %v195_v40 = vadd.f32 %v194_v39, %v146_v38  ;;  %v290_v41 = vpop.f32.mrb[3].mxu1  ;;  %v198_v42 = vmax.f32 %v192_v36, 0.0 }
 0x1c8   :  { %v199_v43 = vmax.f32 %v195_v40, 0.0 }
 0x1ca   :  { %v200_v44 = vpack.c.bf16 %v199_v43, %v198_v42 }
 0x1cc   :  { %292 = vmatpush3.bf16.msra.mxu0 %v200_v44 }
 0x1cf   :  { %294 = vmatmul.mubr.msk.bf16.vlgmr.msra.gmra.mrb[4].mxu0 %vm212_vm3, %v201_v45 }
 0x2a2   :  { %v250_v51 = vpop.f32.mrb[4].mxu0 }
 0x2a3   :  { %v251_v52 = vadd.f32 %v250_v51, %v211_v50  ;;  %v295_v53 = vpop.f32.mrb[5].mxu0 }
 0x2a4   :  { %v253_v54 = vpop.f32.mrb[6].mxu0 }
 0x2a5   :  { %257 = vst.msk [vmem:[%s399_s7] sm:$0x1] %vm256_vm4, %v251_v52  ;;  %v296_v55 = vpop.f32.mrb[7].mxu0 }

</bundles_post_ra>
